<compile_context>
chip_gen: v5e
topology: v5e:2x2
jax: 0.10.0
libtpu: 0.0.40
codegen_flags: <defaults>
</compile_context>

<pallas_src>
import jax
import jax.numpy as jnp
from jax.experimental import pallas as pl
from jax.experimental.pallas import tpu as pltpu


HIDDEN = 50        # logical hidden width (fixed by the torch module)
HIDDEN_PAD = 128   # lane-padded hidden width used inside the kernel
LANE = 128


def _round_up(x, m):
    return (x + m - 1) // m * m


def mlp_kernel(x_ref, w1_ref, b1_ref, w2_ref, b2_ref, w3_ref, b3_ref,
               w4_ref, b4_ref, o_ref):
    # Dropout is identity in eval mode.
    # In-kernel cast to the MXU operand dtype (free filler under the matmuls).
    x = x_ref[...].astype(w1_ref.dtype)
    # Layer 1: Linear + ReLU (MXU in bf16 operands, f32 accumulation).
    h = jnp.dot(x, w1_ref[...], preferred_element_type=jnp.float32)
    h = jnp.maximum(h + b1_ref[...], 0.0)
    # Layer 2: Linear + ReLU
    h = jnp.dot(h.astype(w2_ref.dtype), w2_ref[...],
                preferred_element_type=jnp.float32)
    h = jnp.maximum(h + b2_ref[...], 0.0)
    # Layer 3: Linear + ReLU
    h = jnp.dot(h.astype(w3_ref.dtype), w3_ref[...],
                preferred_element_type=jnp.float32)
    h = jnp.maximum(h + b3_ref[...], 0.0)
    # Layer 4: Linear (no activation), lane-dense (padded) output.
    out = jnp.dot(h.astype(w4_ref.dtype), w4_ref[...],
                  preferred_element_type=jnp.float32) + b4_ref[...]
    o_ref[...] = out.astype(o_ref.dtype)


def _prepare_params(params, compute_dtype, out_c_pad):
    """Zero-pad hidden dim 50->128 and out dim out_c->out_c_pad; cast matmul
    operands to compute_dtype. Biases stay float32 (f32 elementwise math).

    Zero padding is exact: padded units get bias 0, ReLU(0)=0, and the
    corresponding fan-in rows / fan-out columns of adjacent weights are 0.
    """
    def pad_to(a, shape):
        pads = [(0, t - s) for s, t in zip(a.shape, shape)]
        return jnp.pad(a, pads)

    in_c = params["w1"].shape[0]
    p = {}
    p["w1"] = pad_to(params["w1"], (in_c, HIDDEN_PAD)).astype(compute_dtype)
    p["b1"] = pad_to(params["b1"], (1, HIDDEN_PAD)).astype(jnp.float32)
    p["w2"] = pad_to(params["w2"], (HIDDEN_PAD, HIDDEN_PAD)).astype(compute_dtype)
    p["b2"] = pad_to(params["b2"], (1, HIDDEN_PAD)).astype(jnp.float32)
    p["w3"] = pad_to(params["w3"], (HIDDEN_PAD, HIDDEN_PAD)).astype(compute_dtype)
    p["b3"] = pad_to(params["b3"], (1, HIDDEN_PAD)).astype(jnp.float32)
    p["w4"] = pad_to(params["w4"], (HIDDEN_PAD, out_c_pad)).astype(compute_dtype)
    p["b4"] = pad_to(params["b4"], (1, out_c_pad)).astype(jnp.float32)
    return p


def _pick_row_tile(n, max_row_tile):
    """Row tile derived from N: multiple of 8, <= max_row_tile, and (when the
    data allows) a grid of >= 2 steps so v7x's second TensorCore gets work."""
    max_row_tile = max(8, _round_up(max_row_tile, 8))
    # Target at least 2 grid steps (unless N is so small one 8-row tile covers it).
    target_grid = max(2, pl.cdiv(n, max_row_tile)) if n > 8 else 1
    row_tile = max(8, _round_up(pl.cdiv(n, target_grid), 8))
    row_tile = min(row_tile, max_row_tile)
    grid = pl.cdiv(n, row_tile)
    n_pad = grid * row_tile
    return row_tile, grid, n_pad


def standard_forward(x, params, *, max_row_tile=1024, compute_dtype=jnp.bfloat16):
    """Fused eval-mode forward of the `Standard` MLP.

    x: (N, in_channels) float32
    params: dict with w1..w4 (fan_in, fan_out) and b1..b4 (1, fan_out), float32
    """
    N, in_c = x.shape
    out_c = params["w4"].shape[1]
    out_c_pad = _round_up(out_c, LANE)

    row_tile, grid_n, n_pad = _pick_row_tile(N, max_row_tile)

    # Only pad rows (no wrapper-side dtype cast: that happens inside the kernel).
    xp = x if n_pad == N else jnp.pad(x, ((0, n_pad - N), (0, 0)))

    pp = _prepare_params(params, compute_dtype, out_c_pad)

    def full_spec(arr):
        ndim = arr.ndim
        return pl.BlockSpec(arr.shape, lambda i, _n=ndim: (0,) * _n)

    in_specs = [
        pl.BlockSpec((row_tile, in_c), lambda i: (i, 0)),          # x tile
        full_spec(pp["w1"]), full_spec(pp["b1"]),
        full_spec(pp["w2"]), full_spec(pp["b2"]),
        full_spec(pp["w3"]), full_spec(pp["b3"]),
        full_spec(pp["w4"]), full_spec(pp["b4"]),
    ]
    out_spec = pl.BlockSpec((row_tile, out_c_pad), lambda i: (i, 0))

    # Advisory cost hint for XLA's scheduler.
    flops = 2 * n_pad * (in_c * HIDDEN_PAD
                         + 2 * HIDDEN_PAD * HIDDEN_PAD
                         + HIDDEN_PAD * out_c_pad)
    weight_bytes = sum(int(v.size) * v.dtype.itemsize for v in pp.values())
    bytes_accessed = (int(xp.size) * xp.dtype.itemsize
                      + n_pad * out_c_pad * 4
                      + weight_bytes)
    cost = pl.CostEstimate(flops=int(flops), transcendentals=0,
                           bytes_accessed=int(bytes_accessed))

    # VMEM footprint: double-buffered x/out tiles, resident weights, plus
    # intermediate f32 activations (~4 x row_tile x 128). Headroom 2x, capped
    # well under v7x's 64 MiB physical VMEM.
    x_tile_b = row_tile * in_c * 4
    out_tile_b = row_tile * out_c_pad * 4
    inter_b = 4 * row_tile * HIDDEN_PAD * 4
    footprint = 2 * (x_tile_b + out_tile_b) + inter_b + weight_bytes
    vmem_limit = int(min(56 << 20, max(2 * footprint, 16 << 20)))

    out = pl.pallas_call(
        mlp_kernel,
        out_shape=jax.ShapeDtypeStruct((n_pad, out_c_pad), jnp.float32),
        grid_spec=pltpu.PrefetchScalarGridSpec(
            num_scalar_prefetch=0,
            grid=(grid_n,),
            in_specs=in_specs,
            out_specs=out_spec,
        ),
        compiler_params=pltpu.CompilerParams(
            dimension_semantics=("parallel",),
            vmem_limit_bytes=vmem_limit),
        cost_estimate=cost,
    )(xp, pp["w1"], pp["b1"], pp["w2"], pp["b2"],
      pp["w3"], pp["b3"], pp["w4"], pp["b4"])

    return out[:N, :out_c].astype(x.dtype)


def init_params(key, in_channels, out_channels):
    """Deterministic init mimicking torch.nn.Linear defaults:
    U(-1/sqrt(fan_in), 1/sqrt(fan_in)) for both weight and bias."""
    dims = [(in_channels, HIDDEN), (HIDDEN, HIDDEN), (HIDDEN, HIDDEN),
            (HIDDEN, out_channels)]
    params = {}
    for idx, (fan_in, fan_out) in enumerate(dims, start=1):
        key, kw, kb = jax.random.split(key, 3)
        bound = 1.0 / (fan_in ** 0.5)
        params[f"w{idx}"] = jax.random.uniform(
            kw, (fan_in, fan_out), jnp.float32, -bound, bound)
        params[f"b{idx}"] = jax.random.uniform(
            kb, (1, fan_out), jnp.float32, -bound, bound)
    return params


def reference_forward_f32(x, params):
    """Pure f32 reference matching the PyTorch module (eval mode)."""
    h = x
    for idx in range(1, 4):
        h = jnp.maximum(h @ params[f"w{idx}"] + params[f"b{idx}"], 0.0)
    return h @ params["w4"] + params["b4"]


def reference_forward_matched(x, params, compute_dtype=jnp.bfloat16):
    """Reference mirroring kernel precision: bf16 matmul operands, f32 accum."""
    h = x.astype(compute_dtype)
    for idx in range(1, 5):
        w = params[f"w{idx}"].astype(compute_dtype)
        y = jnp.dot(h, w, preferred_element_type=jnp.float32) + params[f"b{idx}"]
        if idx < 4:
            h = jnp.maximum(y, 0.0).astype(compute_dtype)
        else:
            h = y
    return h


if __name__ == "__main__":
    key = jax.random.PRNGKey(0)
    in_channels, out_channels = 32, 4
    N = 300  # not a multiple of 8 or the tile: exercises tile derivation + pad

    k_x, k_p = jax.random.split(key)
    x = jax.random.normal(k_x, (N, in_channels), jnp.float32)
    params = init_params(k_p, in_channels, out_channels)

    out = standard_forward(x, params, max_row_tile=1024)
    out = jax.block_until_ready(out)

    ref_matched = reference_forward_matched(x, params)   # same operand precision
    ref_f32 = reference_forward_f32(x, params)           # the PyTorch-spec math

    assert out.shape == (N, out_channels)
    assert jnp.allclose(out, ref_matched, atol=5e-3, rtol=5e-3), \
        "mismatch vs precision-matched reference"
    assert jnp.allclose(out, ref_f32, atol=5e-2, rtol=5e-2), \
        "mismatch vs f32 reference beyond bf16 tolerance"

    print("KERNEL_OK")
</pallas_src>

<mosaic_0001>
module attributes {stable_mosaic.version = 11 : i64} {
  func.func @mlp_kernel(%arg0: i32, %arg1: memref<152x32xf32, #tpu.memory_space<vmem>>, %arg2: memref<32x128xbf16, #tpu.memory_space<vmem>>, %arg3: memref<1x128xf32, #tpu.memory_space<vmem>>, %arg4: memref<128x128xbf16, #tpu.memory_space<vmem>>, %arg5: memref<1x128xf32, #tpu.memory_space<vmem>>, %arg6: memref<128x128xbf16, #tpu.memory_space<vmem>>, %arg7: memref<1x128xf32, #tpu.memory_space<vmem>>, %arg8: memref<128x128xbf16, #tpu.memory_space<vmem>>, %arg9: memref<1x128xf32, #tpu.memory_space<vmem>>, %arg10: memref<152x128xf32, #tpu.memory_space<vmem>>) attributes {dimension_semantics = [#tpu.dimension_semantics<parallel>], iteration_bounds = array<i64: 2>, scalar_prefetch = 0 : i64, scratch_operands = 0 : i64, tpu.core_type = #tpu.core_type<tc>, window_params = [{transform_indices = @transform_0, window_bounds = array<i64: 152, 32>}, {pipeline_mode = #tpu.pipeline_mode<synchronous>, transform_indices = @transform_1, window_bounds = array<i64: 32, 128>}, {pipeline_mode = #tpu.pipeline_mode<synchronous>, transform_indices = @transform_2, window_bounds = array<i64: 1, 128>}, {pipeline_mode = #tpu.pipeline_mode<synchronous>, transform_indices = @transform_3, window_bounds = array<i64: 128, 128>}, {pipeline_mode = #tpu.pipeline_mode<synchronous>, transform_indices = @transform_4, window_bounds = array<i64: 1, 128>}, {pipeline_mode = #tpu.pipeline_mode<synchronous>, transform_indices = @transform_5, window_bounds = array<i64: 128, 128>}, {pipeline_mode = #tpu.pipeline_mode<synchronous>, transform_indices = @transform_6, window_bounds = array<i64: 1, 128>}, {pipeline_mode = #tpu.pipeline_mode<synchronous>, transform_indices = @transform_7, window_bounds = array<i64: 128, 128>}, {pipeline_mode = #tpu.pipeline_mode<synchronous>, transform_indices = @transform_8, window_bounds = array<i64: 1, 128>}, {transform_indices = @transform_9, window_bounds = array<i64: 152, 128>}]} {
    %c0 = arith.constant 0 : index
    %c0_0 = arith.constant 0 : index
    %0 = vector.load %arg1[%c0, %c0_0] : memref<152x32xf32, #tpu.memory_space<vmem>>, vector<152x32xf32>
    %1 = arith.truncf %0 : vector<152x32xf32> to vector<152x32xbf16>
    %c0_1 = arith.constant 0 : index
    %c0_2 = arith.constant 0 : index
    %2 = vector.load %arg2[%c0_1, %c0_2] : memref<32x128xbf16, #tpu.memory_space<vmem>>, vector<32x128xbf16>
    %cst = arith.constant dense<0.000000e+00> : vector<152x128xf32>
    %3 = tpu.matmul %1, %2, %cst {dimension_numbers = #tpu.dot_dimension_numbers<[1], [0], [0], [1], [0, 0, 1, 1], [], []>} : vector<152x32xbf16>, vector<32x128xbf16>, vector<152x128xf32> -> vector<152x128xf32>
    %c0_3 = arith.constant 0 : index
    %c0_4 = arith.constant 0 : index
    %4 = vector.load %arg3[%c0_3, %c0_4] : memref<1x128xf32, #tpu.memory_space<vmem>>, vector<1x128xf32>
    %5 = vector.broadcast %4 : vector<1x128xf32> to vector<152x128xf32>
    %6 = arith.addf %3, %5 : vector<152x128xf32>
    %cst_5 = arith.constant 0.000000e+00 : f32
    %7 = vector.broadcast %cst_5 : f32 to vector<152x128xf32>
    %8 = arith.maximumf %6, %7 : vector<152x128xf32>
    %9 = arith.truncf %8 : vector<152x128xf32> to vector<152x128xbf16>
    %c0_6 = arith.constant 0 : index
    %c0_7 = arith.constant 0 : index
    %10 = vector.load %arg4[%c0_6, %c0_7] : memref<128x128xbf16, #tpu.memory_space<vmem>>, vector<128x128xbf16>
    %cst_8 = arith.constant dense<0.000000e+00> : vector<152x128xf32>
    %11 = tpu.matmul %9, %10, %cst_8 {dimension_numbers = #tpu.dot_dimension_numbers<[1], [0], [0], [1], [0, 0, 1, 1], [], []>} : vector<152x128xbf16>, vector<128x128xbf16>, vector<152x128xf32> -> vector<152x128xf32>
    %c0_9 = arith.constant 0 : index
    %c0_10 = arith.constant 0 : index
    %12 = vector.load %arg5[%c0_9, %c0_10] : memref<1x128xf32, #tpu.memory_space<vmem>>, vector<1x128xf32>
    %13 = vector.broadcast %12 : vector<1x128xf32> to vector<152x128xf32>
    %14 = arith.addf %11, %13 : vector<152x128xf32>
    %cst_11 = arith.constant 0.000000e+00 : f32
    %15 = vector.broadcast %cst_11 : f32 to vector<152x128xf32>
    %16 = arith.maximumf %14, %15 : vector<152x128xf32>
    %17 = arith.truncf %16 : vector<152x128xf32> to vector<152x128xbf16>
    %c0_12 = arith.constant 0 : index
    %c0_13 = arith.constant 0 : index
    %18 = vector.load %arg6[%c0_12, %c0_13] : memref<128x128xbf16, #tpu.memory_space<vmem>>, vector<128x128xbf16>
    %cst_14 = arith.constant dense<0.000000e+00> : vector<152x128xf32>
    %19 = tpu.matmul %17, %18, %cst_14 {dimension_numbers = #tpu.dot_dimension_numbers<[1], [0], [0], [1], [0, 0, 1, 1], [], []>} : vector<152x128xbf16>, vector<128x128xbf16>, vector<152x128xf32> -> vector<152x128xf32>
    %c0_15 = arith.constant 0 : index
    %c0_16 = arith.constant 0 : index
    %20 = vector.load %arg7[%c0_15, %c0_16] : memref<1x128xf32, #tpu.memory_space<vmem>>, vector<1x128xf32>
    %21 = vector.broadcast %20 : vector<1x128xf32> to vector<152x128xf32>
    %22 = arith.addf %19, %21 : vector<152x128xf32>
    %cst_17 = arith.constant 0.000000e+00 : f32
    %23 = vector.broadcast %cst_17 : f32 to vector<152x128xf32>
    %24 = arith.maximumf %22, %23 : vector<152x128xf32>
    %25 = arith.truncf %24 : vector<152x128xf32> to vector<152x128xbf16>
    %c0_18 = arith.constant 0 : index
    %c0_19 = arith.constant 0 : index
    %26 = vector.load %arg8[%c0_18, %c0_19] : memref<128x128xbf16, #tpu.memory_space<vmem>>, vector<128x128xbf16>
    %cst_20 = arith.constant dense<0.000000e+00> : vector<152x128xf32>
    %27 = tpu.matmul %25, %26, %cst_20 {dimension_numbers = #tpu.dot_dimension_numbers<[1], [0], [0], [1], [0, 0, 1, 1], [], []>} : vector<152x128xbf16>, vector<128x128xbf16>, vector<152x128xf32> -> vector<152x128xf32>
    %c0_21 = arith.constant 0 : index
    %c0_22 = arith.constant 0 : index
    %28 = vector.load %arg9[%c0_21, %c0_22] : memref<1x128xf32, #tpu.memory_space<vmem>>, vector<1x128xf32>
    %29 = vector.broadcast %28 : vector<1x128xf32> to vector<152x128xf32>
    %30 = arith.addf %27, %29 : vector<152x128xf32>
    %c0_23 = arith.constant 0 : index
    %c0_24 = arith.constant 0 : index
    %31 = vector.load %arg10[%c0_23, %c0_24] : memref<152x128xf32, #tpu.memory_space<vmem>>, vector<152x128xf32>
    tpu.vector_store %arg10[%c0_23, %c0_24], %30 {strides = array<i32>} : memref<152x128xf32, #tpu.memory_space<vmem>>, vector<152x128xf32>,
    return
  }
  func.func @transform_0(%arg0: i32) -> (i32, i32) {
    %c0_i32 = arith.constant 0 : i32
    %c0_i32_0 = arith.constant 0 : i32
    return %arg0, %c0_i32 : i32, i32
  }
  func.func @transform_1(%arg0: i32) -> (i32, i32) {
    %c0_i32 = arith.constant 0 : i32
    %c0_i32_0 = arith.constant 0 : i32
    %c0_i32_1 = arith.constant 0 : i32
    return %c0_i32, %c0_i32_0 : i32, i32
  }
  func.func @transform_2(%arg0: i32) -> (i32, i32) {
    %c0_i32 = arith.constant 0 : i32
    %c0_i32_0 = arith.constant 0 : i32
    %c0_i32_1 = arith.constant 0 : i32
    return %c0_i32, %c0_i32_0 : i32, i32
  }
  func.func @transform_3(%arg0: i32) -> (i32, i32) {
    %c0_i32 = arith.constant 0 : i32
    %c0_i32_0 = arith.constant 0 : i32
    %c0_i32_1 = arith.constant 0 : i32
    return %c0_i32, %c0_i32_0 : i32, i32
  }
  func.func @transform_4(%arg0: i32) -> (i32, i32) {
    %c0_i32 = arith.constant 0 : i32
    %c0_i32_0 = arith.constant 0 : i32
    %c0_i32_1 = arith.constant 0 : i32
    return %c0_i32, %c0_i32_0 : i32, i32
  }
  func.func @transform_5(%arg0: i32) -> (i32, i32) {
    %c0_i32 = arith.constant 0 : i32
    %c0_i32_0 = arith.constant 0 : i32
    %c0_i32_1 = arith.constant 0 : i32
    return %c0_i32, %c0_i32_0 : i32, i32
  }
  func.func @transform_6(%arg0: i32) -> (i32, i32) {
    %c0_i32 = arith.constant 0 : i32
    %c0_i32_0 = arith.constant 0 : i32
    %c0_i32_1 = arith.constant 0 : i32
    return %c0_i32, %c0_i32_0 : i32, i32
  }
  func.func @transform_7(%arg0: i32) -> (i32, i32) {
    %c0_i32 = arith.constant 0 : i32
    %c0_i32_0 = arith.constant 0 : i32
    %c0_i32_1 = arith.constant 0 : i32
    return %c0_i32, %c0_i32_0 : i32, i32
  }
  func.func @transform_8(%arg0: i32) -> (i32, i32) {
    %c0_i32 = arith.constant 0 : i32
    %c0_i32_0 = arith.constant 0 : i32
    %c0_i32_1 = arith.constant 0 : i32
    return %c0_i32, %c0_i32_0 : i32, i32
  }
  func.func @transform_9(%arg0: i32) -> (i32, i32) {
    %c0_i32 = arith.constant 0 : i32
    %c0_i32_0 = arith.constant 0 : i32
    return %arg0, %c0_i32 : i32, i32
  }
}

</mosaic_0001>

<bundles_post_ra>
// kernel: tpu_custom_call.1
= control target key start
LH: loop header
LB: loop body
LE: loop exit
PB: predicated region body
PF: predicated region fallthrough
CT: control target
= control target key end

     0   :  { %14 = vsyncpa [#allocation3], 0  ;;  %s1661_s0 = inlined_call_operand.vmem [shape: f32[304,32], index: 0, kind: input, shape index: {}]   ;;  %s1662_s1 = inlined_call_operand.vmem [shape: bf16[32,128], index: 1, kind: input, shape index: {}]   ;;  %s1663_s2 = inlined_call_operand.vmem [shape: f32[1,128], index: 2, kind: input, shape index: {}]   ;;  %s1664_s3 = inlined_call_operand.vmem [shape: bf16[128,128], index: 3, kind: input, shape index: {}]   ;;  %s1665_s4 = inlined_call_operand.vmem [shape: f32[1,128], index: 4, kind: input, shape index: {}]   ;;  %s1666_s5 = inlined_call_operand.vmem [shape: bf16[128,128], index: 5, kind: input, shape index: {}]   ;;  %s1667_s6 = inlined_call_operand.vmem [shape: f32[1,128], index: 6, kind: input, shape index: {}]   ;;  %s1668_s7 = inlined_call_operand.vmem [shape: bf16[128,128], index: 7, kind: input, shape index: {}]   ;;  %s1669_s8 = inlined_call_operand.vmem [shape: f32[1,128], index: 8, kind: input, shape index: {}]   ;;  %s1670_s9 = inlined_call_operand.hbm [shape: f32[304,128], index: 9, kind: output, shape index: {}]  }
   0x1   :  { %16 = vsyncpa [#allocation3 + $0x1], 0  ;;  %s1346_s30 = smov 0   ;;  %s1348_s10 = smov 0  }
   0x2   :  { %s1350_s11 = smov 0   ;;  %s1352_s12 = smov 0  }
   0x3 LB: > { %s1367_s13 = sadd.s32 4294967295, %s1292_s12   ;;  %s1035_s14 = sadd.s32 4294967294, %s1292_s12   ;;  %s1292_s12 = sphi %s1352_s12, %s1676_s12   ;;  %s1288_s11 = sphi %s1350_s11, %s1675_s11   ;;  %s1284_s10 = sphi %s1348_s10, %s1674_s10   ;;  %s1280_s30 = sphi %s1346_s30, %s1673_s30  }
   0x4   : > { %s1371_s15 = sadd.s32 1, %s1292_s12   ;;  %s223_s16 = sadd.s32 1, %s1288_s11 }
   0x5   : > { %s220_s17 = ssub.s32 %s1292_s12, %s1371_s15  ;;  %p233_p0 = scmp.ne.s32.totalorder %s1288_s11, %s1284_s10 }
   0x6   : > { %p221_p1 = scmp.eq.s32.totalorder %s220_s17, 0  ;;  %p234_p2 = scmp.eq.s32.totalorder %s1367_s13, 1 }
   0x7   : > { %p239_p3 = scmp.ne.s32.totalorder %s1284_s10, %s1280_s30  ;;  %p240_p4 = scmp.eq.s32.totalorder %s1035_s14, 1 }
   0x8   : > { %s1382_s18 = scalar_select %p221_p1, %s1288_s11, %s223_s16  }
   0x9   : > { %p1384_p5 = por %p234_p2, %p233_p0  ;;  %p1388_p6 = por %p240_p4, %p239_p3 }
   0xa   : > { %p1038_p7 = scmp.ge.s32.totalorder %s1292_s12, 1  ;;  %p291_p8 = scmp.lt.s32.totalorder %s1292_s12, 3 }
   0xc   : > { %p292_p9 = pnand %p1038_p7, %p291_p8 }
   0xd   : > { %s327_s23 = smul.u32 (!%p292_p9), 19, %s1367_s13 }
   0xe   : > { %295 = sbr.rel (%p292_p9) target bundleno = 737 (0x2e1), region = 56 }
   0xf   : > { %p328_p10 = scmp.lt.s32.totalorder (!%p292_p9), %s327_s23, 37  ;;  %s1183_s14 = smul.u32 (!%p292_p9), 152, %s1367_s13 }
  0x11   : > { %s969_s21 = scalar_lea.hbm (!%p292_p9), %s1670_s9, %s1183_s14  ;;  %s1250_s14 = scalar_lea.hbm (!%p292_p9), %s1670_s9, 304 }
  0x13   : > { %v1158_v0 = vld [vmem:[%s1662_s1 + $0x8] sm:$0xff]  ;;  %v1157_v1 = vld [vmem:[%s1662_s1] sm:$0xff]  ;;  %s1678_s23 = smov (!%p328_p10, %s327_s23), 37  ;;  %vm384_vm0 = vcmask 261120   ;;  %v1166_v17 = vld [vmem:[%s1664_s3 + $0x38] sm:$0xff] }
  0x14   : > { %421 = vmatpush.bf16.msra.mxu0 %v1158_v0  ;;  %s1039_s26 = sshll.u32 %s1678_s23, 3  ;;  %570 = vmatpush.bf16.msra.mxu1 %v1166_v17  ;;  %v1165_v21 = vld [vmem:[%s1664_s3 + $0x30] sm:$0xff]  ;;  %v1164_v22 = vld [vmem:[%s1664_s3 + $0x28] sm:$0xff]  ;;  %v1163_v23 = vld [vmem:[%s1664_s3 + $0x20] sm:$0xff]  ;;  %s972_s23 = sshll.u32 %s969_s21, 4  ;;  %s973_s23 = int_to_ptr.hbm [resolvable:$true] %s972_s23 }
  0x15   : > { %s1404_s29 = scalar_lea.vmem %s1661_s0, %s1039_s26  ;;  %v1162_v26 = vld [vmem:[%s1664_s3 + $0x18] sm:$0xff]  ;;  %v1161_v28 = vld [vmem:[%s1664_s3 + $0x10] sm:$0xff]  ;;  %v1160_v29 = vld [vmem:[%s1664_s3 + $0x8] sm:$0xff]  ;;  %s1244_s13 = sshra.s32 %s973_s23, 4  ;;  %s1245_s13 = int_to_ptr.hbm [resolvable:$true] %s1244_s13 }
  0x16   : > { %v335_v2 = vld [vmem:[%s1404_s29] sm:$0xff]  ;;  %v336_v3 = vld [vmem:[%s1404_s29 + $0x8] sm:$0xff]  ;;  %v337_v5 = vld [vmem:[%s1404_s29 + $0x10] sm:$0xff]  ;;  %p1251_p0 = scmp.lt.s32.totalorder %s1245_s13, %s1670_s9 }
  0x17   : > { %v354_v4 = vpack.c.bf16 %v336_v3, %v335_v2  ;;  %v338_v6 = vld [vmem:[%s1404_s29 + $0x18] sm:$0xff]  ;;  %v339_v8 = vld [vmem:[%s1404_s29 + $0x20] sm:$0xff]  ;;  %v340_v9 = vld [vmem:[%s1404_s29 + $0x28] sm:$0xff] }
  0x18   : > { %422 = vmatpush.bf16.msra.mxu0 %v1157_v1  ;;  %v355_v7 = vpack.c.bf16 %v338_v6, %v337_v5  ;;  %v356_v10 = vpack.c.bf16 %v340_v9, %v339_v8  ;;  %v341_v11 = vld [vmem:[%s1404_s29 + $0x30] sm:$0xff]  ;;  %v342_v12 = vld [vmem:[%s1404_s29 + $0x38] sm:$0xff]  ;;  %v343_v14 = vld [vmem:[%s1404_s29 + $0x40] sm:$0xff]  ;;  %571 = vmatpush.bf16.msra.mxu1 %v1165_v21 }
  0x19   : > { %v357_v13 = vpack.c.bf16 %v342_v12, %v341_v11  ;;  %v344_v15 = vld [vmem:[%s1404_s29 + $0x48] sm:$0xff]  ;;  %v345_v18 = vld [vmem:[%s1404_s29 + $0x50] sm:$0xff]  ;;  %v346_v19 = vld [vmem:[%s1404_s29 + $0x58] sm:$0xff] }
  0x1a   : > { %v358_v16 = vpack.c.bf16 %v344_v15, %v343_v14  ;;  %v359_v20 = vpack.c.bf16 %v346_v19, %v345_v18  ;;  %v347_v24 = vld [vmem:[%s1404_s29 + $0x60] sm:$0xff]  ;;  %v348_v25 = vld [vmem:[%s1404_s29 + $0x68] sm:$0xff]  ;;  %v349_v31 = vld [vmem:[%s1404_s29 + $0x70] sm:$0xff] }
  0x1b   : > { %1048 = vmatmul.msk.bf16.vlgmr.msra.gmra.mxu0 %vm384_vm0, %v354_v4  ;;  %v360_v27 = vpack.c.bf16 %v348_v25, %v347_v24  ;;  %v1159_v30 = vld [vmem:[%s1664_s3] sm:$0xff]  ;;  %v350_v32 = vld [vmem:[%s1404_s29 + $0x78] sm:$0xff]  ;;  %v352_v35 = vld [vmem:[%s1404_s29 + $0x88] sm:$0xff] }
  0x1c   : > { %572 = vmatpush.bf16.msra.mxu1 %v1164_v22  ;;  %v361_v33 = vpack.c.bf16 %v350_v32, %v349_v31  ;;  %v351_v34 = vld [vmem:[%s1404_s29 + $0x80] sm:$0xff]  ;;  %v353_v44 = vld [vmem:[%s1404_s29 + $0x90] sm:$0xff]  ;;  %v1174_v15 = vld [vmem:[%s1666_s5 + $0x38] sm:$0xff]  ;;  %s324_s29 = sand.u32 1, %s1284_s10  }
  0x1d   : > { %v362_v36 = vpack.c.bf16 %v352_v35, %v351_v34  ;;  %v1459_v38 = vld [vmem:[%s1663_s2] ss:$0 sm:$0xff]  ;;  %v363_v46 = vpack.c.bf16 %v353_v44, %v353_v44  ;;  %725 = vmatpush.bf16.msra.mxu2 %v1174_v15  ;;  %v1173_v19 = vld [vmem:[%s1666_s5 + $0x30] sm:$0xff]  ;;  %v1172_v21 = vld [vmem:[%s1666_s5 + $0x28] sm:$0xff]  ;;  %s1184_s25 = smul.u32 152, %s324_s29  ;;  %s958_s24 = scalar_lea.sflag [#allocation3], %s324_s29 }
  0x1e   : > { %v1171_v22 = vld [vmem:[%s1666_s5 + $0x20] sm:$0xff]  ;;  %v1168_v32 = vld [vmem:[%s1666_s5 + $0x8] sm:$0xff] }
  0x1f   : > { %s1588_s28 = scalar_lea.vmem [#allocation2], %s1184_s25  ;;  %s1246_s25 = scalar_lea.hbm %s1245_s13, 152 }
  0x20   : > { %573 = vmatpush.bf16.msra.mxu1 %v1163_v23  ;;  %s970_s22 = sshll.u32 %s1588_s28, 4  ;;  %p1247_p11 = scmp.ne.s32.totalorder %s1245_s13, %s1246_s25  ;;  %s971_s22 = int_to_ptr.vmem [resolvable:$true] %s970_s22 }
  0x21   : > { %726 = vmatpush.bf16.msra.mxu2 %v1173_v19  ;;  %p1252_p1 = scmp.lt.s32.totalorder %s1250_s14, %s1246_s25 }
  0x22   : > { %p1248_p12 = pnand %p1247_p11, %p1384_p5 }
  0x23   : > { %p1253_p2 = por %p1252_p1, %p1251_p0 }
  0x24   : > { %574 = vmatpush.bf16.msra.mxu1 %v1162_v26  ;;  %v1170_v26 = vld [vmem:[%s1666_s5 + $0x18] sm:$0xff]  ;;  %p1249_p13 = pneg %p1248_p12 }
  0x25   : > { %727 = vmatpush.bf16.msra.mxu2 %v1172_v21 }
  0x26   : > { %p1254_p3 = pnand %p1253_p2, %p1249_p13 }
  0x28   : > { %575 = vmatpush.bf16.msra.mxu1 %v1161_v28 }
  0x29   : > { %728 = vmatpush.bf16.msra.mxu2 %v1171_v22 }
  0x2b   : > { %1049 = vmatmul.msk.bf16.gmra.mxu0 %vm384_vm0, %v355_v7 }
  0x2c   : > { %576 = vmatpush.bf16.msra.mxu1 %v1160_v29 }
  0x2d   : > { %729 = vmatpush.bf16.msra.mxu2 %v1170_v26 }
  0x30   : > { %577 = vmatpush.bf16.msra.mxu1 %v1159_v30  ;;  %v1169_v30 = vld [vmem:[%s1666_s5 + $0x10] sm:$0xff] }
  0x31   : > { %730 = vmatpush.bf16.msra.mxu2 %v1169_v30 }
  0x35   : > { %731 = vmatpush.bf16.msra.mxu2 %v1168_v32  ;;  %v1182_v32 = vld [vmem:[%s1668_s7 + $0x38] sm:$0xff] }
  0x36   : > { %880 = vmatpush.bf16.msra.mxu3 %v1182_v32 }
  0x3b   : > { %1050 = vmatmul.msk.bf16.gmra.mxu0 %vm384_vm0, %v356_v10 }
  0x4b   : > { %1051 = vmatmul.msk.bf16.gmra.mxu0 %vm384_vm0, %v357_v13 }
  0x5b   : > { %1052 = vmatmul.msk.bf16.gmra.mxu0 %vm384_vm0, %v358_v16 }
  0x6b   : > { %1053 = vmatmul.msk.bf16.gmra.mxu0 %vm384_vm0, %v359_v20 }
  0x7b   : > { %1054 = vmatmul.msk.bf16.gmra.mxu0 %vm384_vm0, %v360_v27 }
  0x8b   : > { %1055 = vmatmul.msk.bf16.gmra.mxu0 %vm384_vm0, %v361_v33  ;;  %v1167_v33 = vld [vmem:[%s1666_s5] sm:$0xff] }
  0x8c   : > { %732 = vmatpush.bf16.msra.mxu2 %v1167_v33  ;;  %v1181_v33 = vld [vmem:[%s1668_s7 + $0x30] sm:$0xff] }
  0x8d   : > { %881 = vmatpush.bf16.msra.mxu3 %v1181_v33 }
  0x98   : > { %v424_v37 = vpop.f32.mrf.mxu0 }
  0x99   : > { %v425_v39 = vadd.f32 %v1459_v38, %v424_v37 }
  0x9b   : > { %1056 = vmatmul.msk.bf16.gmra.mxu0 %vm384_vm0, %v362_v36  ;;  %v473_v42 = vmax.f32 %v425_v39, 0.0 }
  0xa0   : > { %v426_v40 = vpop.f32.mrf.mxu0 }
  0xa1   : > { %v427_v41 = vadd.f32 %v1459_v38, %v426_v40 }
  0xa3   : > { %v474_v43 = vmax.f32 %v427_v41, 0.0 }
  0xa5   : > { %v492_v45 = vpack.c.bf16 %v474_v43, %v473_v42 }
  0xa7   : > { %578 = vmatmul.bf16.vlgmr.msra.gmra.mxu1 %v492_v45 }
  0xa8   : > { %v429_v47 = vpop.f32.mrf.mxu0 }
  0xa9   : > { %v430_v48 = vadd.f32 %v1459_v38, %v429_v47 }
  0xab   : > { %1057 = vmatmul.msk.bf16.gmra.mxu0 %vm384_vm0, %v363_v46  ;;  %v475_v51 = vmax.f32 %v430_v48, 0.0 }
  0xb0   : > { %v431_v49 = vpop.f32.mrf.mxu0 }
  0xb1   : > { %v432_v50 = vadd.f32 %v1459_v38, %v431_v49  ;;  %v1509_v49 = vld [vmem:[%s1665_s4] ss:$0 sm:$0xff] }
  0xb3   : > { %v476_v52 = vmax.f32 %v432_v50, 0.0 }
  0xb5   : > { %v493_v53 = vpack.c.bf16 %v476_v52, %v475_v51 }
  0xb7   : > { %583 = vmatmul.bf16.gmra.mxu1 %v493_v53 }
  0xb8   : > { %v434_v54 = vpop.f32.mrf.mxu0 }
  0xb9   : > { %v435_v55 = vadd.f32 %v1459_v38, %v434_v54 }
  0xbb   : > { %v477_v58 = vmax.f32 %v435_v55, 0.0 }
  0xc0   : > { %v436_v56 = vpop.f32.mrf.mxu0 }
  0xc1   : > { %v437_v57 = vadd.f32 %v1459_v38, %v436_v56 }
  0xc3   : > { %v478_v59 = vmax.f32 %v437_v57, 0.0 }
  0xc5   : > { %v494_v60 = vpack.c.bf16 %v478_v59, %v477_v58 }
  0xc7   : > { %588 = vmatmul.bf16.gmra.mxu1 %v494_v60 }
  0xc8   : > { %v439_v61 = vpop.f32.mrf.mxu0 }
  0xc9   : > { %v440_v62 = vadd.f32 %v1459_v38, %v439_v61 }
  0xcb   : > { %v479_v1 = vmax.f32 %v440_v62, 0.0 }
  0xd0   : > { %v441_v63 = vpop.f32.mrf.mxu0 }
  0xd1   : > { %v442_v0 = vadd.f32 %v1459_v38, %v441_v63 }
  0xd3   : > { %v480_v2 = vmax.f32 %v442_v0, 0.0 }
  0xd5   : > { %v495_v3 = vpack.c.bf16 %v480_v2, %v479_v1 }
  0xd7   : > { %593 = vmatmul.bf16.gmra.mxu1 %v495_v3 }
  0xd8   : > { %v444_v4 = vpop.f32.mrf.mxu0 }
  0xd9   : > { %v445_v5 = vadd.f32 %v1459_v38, %v444_v4 }
  0xdb   : > { %v481_v8 = vmax.f32 %v445_v5, 0.0 }
  0xe0   : > { %v446_v6 = vpop.f32.mrf.mxu0 }
  0xe1   : > { %v447_v7 = vadd.f32 %v1459_v38, %v446_v6 }
  0xe3   : > { %v482_v9 = vmax.f32 %v447_v7, 0.0 }
  0xe5   : > { %v496_v10 = vpack.c.bf16 %v482_v9, %v481_v8 }
  0xe7   : > { %598 = vmatmul.bf16.gmra.mxu1 %v496_v10 }
  0xe8   : > { %v449_v11 = vpop.f32.mrf.mxu0 }
  0xe9   : > { %v450_v12 = vadd.f32 %v1459_v38, %v449_v11 }
  0xeb   : > { %v483_v16 = vmax.f32 %v450_v12, 0.0 }
  0xf0   : > { %v451_v13 = vpop.f32.mrf.mxu0 }
  0xf1   : > { %v452_v14 = vadd.f32 %v1459_v38, %v451_v13 }
  0xf3   : > { %v484_v17 = vmax.f32 %v452_v14, 0.0 }
  0xf5   : > { %v497_v18 = vpack.c.bf16 %v484_v17, %v483_v16 }
  0xf7   : > { %603 = vmatmul.bf16.gmra.mxu1 %v497_v18 }
  0xf8   : > { %v454_v20 = vpop.f32.mrf.mxu0 }
  0xf9   : > { %v455_v23 = vadd.f32 %v1459_v38, %v454_v20 }
  0xfb   : > { %v485_v27 = vmax.f32 %v455_v23, 0.0 }
 0x100   : > { %v456_v24 = vpop.f32.mrf.mxu0 }
 0x101   : > { %v457_v25 = vadd.f32 %v1459_v38, %v456_v24 }
 0x103   : > { %v486_v28 = vmax.f32 %v457_v25, 0.0 }
 0x105   : > { %v498_v29 = vpack.c.bf16 %v486_v28, %v485_v27 }
 0x107   : > { %608 = vmatmul.bf16.gmra.mxu1 %v498_v29 }
 0x108   : > { %v459_v31 = vpop.f32.mrf.mxu0 }
 0x109   : > { %v460_v34 = vadd.f32 %v1459_v38, %v459_v31 }
 0x10b   : > { %v487_v37 = vmax.f32 %v460_v34, 0.0 }
 0x110   : > { %v461_v35 = vpop.f32.mrf.mxu0 }
 0x111   : > { %v462_v36 = vadd.f32 %v1459_v38, %v461_v35 }
 0x113   : > { %v488_v39 = vmax.f32 %v462_v36, 0.0  ;;  %v1180_v36 = vld [vmem:[%s1668_s7 + $0x28] sm:$0xff] }
 0x114   : > { %882 = vmatpush.bf16.msra.mxu3 %v1180_v36 }
 0x115   : > { %v499_v40 = vpack.c.bf16 %v488_v39, %v487_v37 }
 0x117   : > { %613 = vmatmul.bf16.gmra.mxu1 %v499_v40 }
 0x118   : > { %v464_v41 = vpop.f32.mrf.mxu0 }
 0x119   : > { %v465_v42 = vadd.f32 %v1459_v38, %v464_v41  ;;  %v1179_v41 = vld [vmem:[%s1668_s7 + $0x20] sm:$0xff] }
 0x11a   : > { %883 = vmatpush.bf16.msra.mxu3 %v1179_v41 }
 0x11b   : > { %v489_v45 = vmax.f32 %v465_v42, 0.0 }
 0x120   : > { %v466_v43 = vpop.f32.mrf.mxu0 }
 0x121   : > { %v467_v44 = vadd.f32 %v1459_v38, %v466_v43 }
 0x123   : > { %v490_v46 = vmax.f32 %v467_v44, 0.0  ;;  %v1178_v44 = vld [vmem:[%s1668_s7 + $0x18] sm:$0xff] }
 0x124   : > { %v579_v47 = vpop.f32.mrf.mxu1  ;;  %884 = vmatpush.bf16.msra.mxu3 %v1178_v44 }
 0x125   : > { %v500_v48 = vpack.c.bf16 %v490_v46, %v489_v45  ;;  %v580_v51 = vadd.f32 %v1509_v49, %v579_v47  ;;  %v1177_v45 = vld [vmem:[%s1668_s7 + $0x10] sm:$0xff] }
 0x127   : > { %618 = vmatmul.bf16.gmra.mxu1 %v500_v48  ;;  %v628_v55 = vmax.f32 %v580_v51, 0.0  ;;  %v1176_v48 = vld [vmem:[%s1668_s7 + $0x8] sm:$0xff] }
 0x128   : > { %v469_v50 = vpop.f32.mrf.mxu0  ;;  %885 = vmatpush.bf16.msra.mxu3 %v1177_v45 }
 0x129   : > { %v470_v52 = vadd.f32 %v1459_v38, %v469_v50 }
 0x12b   : > { %v491_v57 = vmax.f32 %v470_v52, 0.0 }
 0x12c   : > { %v581_v53 = vpop.f32.mrf.mxu1  ;;  %886 = vmatpush.bf16.msra.mxu3 %v1176_v48 }
 0x12d   : > { %v582_v54 = vadd.f32 %v1509_v49, %v581_v53  ;;  %v501_v60 = vpack.c.bf16 %v491_v57, %v491_v57  ;;  %v1175_v53 = vld [vmem:[%s1668_s7] sm:$0xff] }
 0x12f   : > { %v629_v56 = vmax.f32 %v582_v54, 0.0 }
 0x130   : > { %v471_v58 = vpop.f32.mrf.mxu0  ;;  %887 = vmatpush.bf16.msra.mxu3 %v1175_v53 }
 0x131   : > { %v647_v59 = vpack.c.bf16 %v629_v56, %v628_v55 }
 0x133   : > { %733 = vmatmul.bf16.vlgmr.msra.gmra.mxu2 %v647_v59 }
 0x134   : > { %v584_v61 = vpop.f32.mrf.mxu1 }
 0x135   : > { %v585_v62 = vadd.f32 %v1509_v49, %v584_v61 }
 0x137   : > { %623 = vmatmul.bf16.gmra.mxu1 %v501_v60  ;;  %v630_v1 = vmax.f32 %v585_v62, 0.0 }
 0x13c   : > { %v586_v63 = vpop.f32.mrf.mxu1 }
 0x13d   : > { %v587_v0 = vadd.f32 %v1509_v49, %v586_v63 }
 0x13f   : > { %v631_v2 = vmax.f32 %v587_v0, 0.0 }
 0x141   : > { %v648_v38 = vpack.c.bf16 %v631_v2, %v630_v1  ;;  %v1558_v1 = vld [vmem:[%s1667_s6] ss:$0 sm:$0xff] }
 0x143   : > { %738 = vmatmul.bf16.gmra.mxu2 %v648_v38 }
 0x144   : > { %v589_v3 = vpop.f32.mrf.mxu1 }
 0x145   : > { %v590_v4 = vadd.f32 %v1509_v49, %v589_v3 }
 0x147   : > { %v632_v7 = vmax.f32 %v590_v4, 0.0 }
 0x14c   : > { %v591_v5 = vpop.f32.mrf.mxu1 }
 0x14d   : > { %v592_v6 = vadd.f32 %v1509_v49, %v591_v5 }
 0x14f   : > { %v633_v8 = vmax.f32 %v592_v6, 0.0 }
 0x151   : > { %v649_v9 = vpack.c.bf16 %v633_v8, %v632_v7 }
 0x153   : > { %743 = vmatmul.bf16.gmra.mxu2 %v649_v9 }
 0x154   : > { %v594_v10 = vpop.f32.mrf.mxu1 }
 0x155   : > { %v595_v11 = vadd.f32 %v1509_v49, %v594_v10 }
 0x157   : > { %v634_v14 = vmax.f32 %v595_v11, 0.0 }
 0x15c   : > { %v596_v12 = vpop.f32.mrf.mxu1 }
 0x15d   : > { %v597_v13 = vadd.f32 %v1509_v49, %v596_v12 }
 0x15f   : > { %v635_v15 = vmax.f32 %v597_v13, 0.0 }
 0x161   : > { %v650_v16 = vpack.c.bf16 %v635_v15, %v634_v14 }
 0x163   : > { %748 = vmatmul.bf16.gmra.mxu2 %v650_v16 }
 0x164   : > { %v599_v17 = vpop.f32.mrf.mxu1 }
 0x165   : > { %v600_v18 = vadd.f32 %v1509_v49, %v599_v17 }
 0x167   : > { %v636_v21 = vmax.f32 %v600_v18, 0.0 }
 0x16c   : > { %v601_v19 = vpop.f32.mrf.mxu1 }
 0x16d   : > { %v602_v20 = vadd.f32 %v1509_v49, %v601_v19 }
 0x16f   : > { %v637_v22 = vmax.f32 %v602_v20, 0.0 }
 0x171   : > { %v651_v23 = vpack.c.bf16 %v637_v22, %v636_v21 }
 0x173   : > { %753 = vmatmul.bf16.gmra.mxu2 %v651_v23 }
 0x174   : > { %v604_v24 = vpop.f32.mrf.mxu1 }
 0x175   : > { %v605_v25 = vadd.f32 %v1509_v49, %v604_v24 }
 0x177   : > { %v638_v28 = vmax.f32 %v605_v25, 0.0 }
 0x17c   : > { %v606_v26 = vpop.f32.mrf.mxu1 }
 0x17d   : > { %v607_v27 = vadd.f32 %v1509_v49, %v606_v26 }
 0x17f   : > { %v639_v29 = vmax.f32 %v607_v27, 0.0 }
 0x181   : > { %v652_v30 = vpack.c.bf16 %v639_v29, %v638_v28 }
 0x183   : > { %758 = vmatmul.bf16.gmra.mxu2 %v652_v30 }
 0x184   : > { %v609_v31 = vpop.f32.mrf.mxu1 }
 0x185   : > { %v610_v34 = vadd.f32 %v1509_v49, %v609_v31 }
 0x187   : > { %v640_v39 = vmax.f32 %v610_v34, 0.0 }
 0x18c   : > { %v611_v35 = vpop.f32.mrf.mxu1 }
 0x18d   : > { %v612_v37 = vadd.f32 %v1509_v49, %v611_v35 }
 0x18f   : > { %v641_v40 = vmax.f32 %v612_v37, 0.0 }
 0x191   : > { %v653_v42 = vpack.c.bf16 %v641_v40, %v640_v39 }
 0x193   : > { %763 = vmatmul.bf16.gmra.mxu2 %v653_v42 }
 0x194   : > { %v614_v43 = vpop.f32.mrf.mxu1 }
 0x195   : > { %v615_v46 = vadd.f32 %v1509_v49, %v614_v43 }
 0x197   : > { %v642_v51 = vmax.f32 %v615_v46, 0.0 }
 0x19c   : > { %v616_v47 = vpop.f32.mrf.mxu1 }
 0x19d   : > { %v617_v50 = vadd.f32 %v1509_v49, %v616_v47 }
 0x19f   : > { %v643_v52 = vmax.f32 %v617_v50, 0.0 }
 0x1a1   : > { %v654_v54 = vpack.c.bf16 %v643_v52, %v642_v51 }
 0x1a3   : > { %768 = vmatmul.bf16.gmra.mxu2 %v654_v54 }
 0x1a4   : > { %v619_v55 = vpop.f32.mrf.mxu1 }
 0x1a5   : > { %v620_v56 = vadd.f32 %v1509_v49, %v619_v55 }
 0x1a7   : > { %v644_v59 = vmax.f32 %v620_v56, 0.0 }
 0x1ac   : > { %v621_v57 = vpop.f32.mrf.mxu1 }
 0x1ad   : > { %v622_v58 = vadd.f32 %v1509_v49, %v621_v57 }
 0x1af   : > { %v645_v60 = vmax.f32 %v622_v58, 0.0 }
 0x1b1   : > { %v655_v61 = vpack.c.bf16 %v645_v60, %v644_v59 }
 0x1b3   : > { %773 = vmatmul.bf16.gmra.mxu2 %v655_v61 }
 0x1b4   : > { %v624_v62 = vpop.f32.mrf.mxu1 }
 0x1b5   : > { %v625_v0 = vadd.f32 %v1509_v49, %v624_v62 }
 0x1b6   : > { %v734_v63 = vpop.f32.mrf.mxu2 }
 0x1b7   : > { %v646_v2 = vmax.f32 %v625_v0, 0.0  ;;  %v735_v3 = vadd.f32 %v1558_v1, %v734_v63 }
 0x1b9   : > { %v656_v6 = vpack.c.bf16 %v646_v2, %v646_v2  ;;  %v783_v7 = vmax.f32 %v735_v3, 0.0  ;;  %v1584_v3 = vld [vmem:[%s1669_s8] ss:$0 sm:$0xff] }
 0x1bc   : > { %v626_v38 = vpop.f32.mrf.mxu1 }
 0x1be   : > { %v736_v4 = vpop.f32.mrf.mxu2 }
 0x1bf   : > { %v737_v5 = vadd.f32 %v1558_v1, %v736_v4 }
 0x1c1   : > { %v784_v8 = vmax.f32 %v737_v5, 0.0 }
 0x1c3   : > { %778 = vmatmul.bf16.gmra.mxu2 %v656_v6  ;;  %v802_v9 = vpack.c.bf16 %v784_v8, %v783_v7 }
 0x1c5   : > { %888 = vmatmul.bf16.vlgmr.msra.gmra.mxu3 %v802_v9 }
 0x1c6   : > { %v739_v10 = vpop.f32.mrf.mxu2 }
 0x1c7   : > { %v740_v49 = vadd.f32 %v1558_v1, %v739_v10 }
 0x1c9   : > { %v785_v13 = vmax.f32 %v740_v49, 0.0 }
 0x1ce   : > { %v741_v11 = vpop.f32.mrf.mxu2 }
 0x1cf   : > { %v742_v12 = vadd.f32 %v1558_v1, %v741_v11 }
 0x1d1   : > { %v786_v14 = vmax.f32 %v742_v12, 0.0 }
 0x1d3   : > { %v803_v15 = vpack.c.bf16 %v786_v14, %v785_v13 }
 0x1d5   : > { %893 = vmatmul.bf16.gmra.mxu3 %v803_v15 }
 0x1d6   : > { %v744_v16 = vpop.f32.mrf.mxu2 }
 0x1d7   : > { %v745_v17 = vadd.f32 %v1558_v1, %v744_v16 }
 0x1d9   : > { %v787_v20 = vmax.f32 %v745_v17, 0.0 }
 0x1de   : > { %v746_v18 = vpop.f32.mrf.mxu2 }
 0x1df   : > { %v747_v19 = vadd.f32 %v1558_v1, %v746_v18 }
 0x1e1   : > { %v788_v21 = vmax.f32 %v747_v19, 0.0 }
 0x1e3   : > { %v804_v22 = vpack.c.bf16 %v788_v21, %v787_v20 }
 0x1e5   : > { %898 = vmatmul.bf16.gmra.mxu3 %v804_v22 }
 0x1e6   : > { %v749_v23 = vpop.f32.mrf.mxu2 }
 0x1e7   : > { %v750_v24 = vadd.f32 %v1558_v1, %v749_v23 }
 0x1e9   : > { %v789_v27 = vmax.f32 %v750_v24, 0.0 }
 0x1ee   : > { %v751_v25 = vpop.f32.mrf.mxu2 }
 0x1ef   : > { %v752_v26 = vadd.f32 %v1558_v1, %v751_v25 }
 0x1f1   : > { %v790_v28 = vmax.f32 %v752_v26, 0.0 }
 0x1f3   : > { %v805_v29 = vpack.c.bf16 %v790_v28, %v789_v27 }
 0x1f5   : > { %903 = vmatmul.bf16.gmra.mxu3 %v805_v29 }
 0x1f6   : > { %v754_v30 = vpop.f32.mrf.mxu2 }
 0x1f7   : > { %v755_v31 = vadd.f32 %v1558_v1, %v754_v30 }
 0x1f9   : > { %v791_v34 = vmax.f32 %v755_v31, 0.0 }
 0x1fe   : > { %v756_v32 = vpop.f32.mrf.mxu2 }
 0x1ff   : > { %v757_v33 = vadd.f32 %v1558_v1, %v756_v32 }
 0x201   : > { %v792_v35 = vmax.f32 %v757_v33, 0.0 }
 0x203   : > { %v806_v36 = vpack.c.bf16 %v792_v35, %v791_v34 }
 0x205   : > { %908 = vmatmul.bf16.gmra.mxu3 %v806_v36 }
 0x206   : > { %v759_v37 = vpop.f32.mrf.mxu2 }
 0x207   : > { %v760_v39 = vadd.f32 %v1558_v1, %v759_v37 }
 0x209   : > { %v793_v42 = vmax.f32 %v760_v39, 0.0 }
 0x20e   : > { %v761_v40 = vpop.f32.mrf.mxu2 }
 0x20f   : > { %v762_v41 = vadd.f32 %v1558_v1, %v761_v40 }
 0x211   : > { %v794_v43 = vmax.f32 %v762_v41, 0.0 }
 0x213   : > { %v807_v44 = vpack.c.bf16 %v794_v43, %v793_v42 }
 0x215   : > { %913 = vmatmul.bf16.gmra.mxu3 %v807_v44 }
 0x216   : > { %v764_v45 = vpop.f32.mrf.mxu2 }
 0x217   : > { %v765_v46 = vadd.f32 %v1558_v1, %v764_v45 }
 0x219   : > { %v795_v50 = vmax.f32 %v765_v46, 0.0 }
 0x21e   : > { %v766_v47 = vpop.f32.mrf.mxu2 }
 0x21f   : > { %v767_v48 = vadd.f32 %v1558_v1, %v766_v47 }
 0x221   : > { %v796_v51 = vmax.f32 %v767_v48, 0.0 }
 0x223   : > { %v808_v52 = vpack.c.bf16 %v796_v51, %v795_v50 }
 0x225   : > { %918 = vmatmul.bf16.gmra.mxu3 %v808_v52 }
 0x226   : > { %v769_v53 = vpop.f32.mrf.mxu2 }
 0x227   : > { %v770_v54 = vadd.f32 %v1558_v1, %v769_v53 }
 0x229   : > { %v797_v57 = vmax.f32 %v770_v54, 0.0 }
 0x22e   : > { %v771_v55 = vpop.f32.mrf.mxu2 }
 0x22f   : > { %v772_v56 = vadd.f32 %v1558_v1, %v771_v55 }
 0x231   : > { %v798_v58 = vmax.f32 %v772_v56, 0.0 }
 0x233   : > { %v809_v59 = vpack.c.bf16 %v798_v58, %v797_v57 }
 0x235   : > { %923 = vmatmul.bf16.gmra.mxu3 %v809_v59 }
 0x236   : > { %v774_v60 = vpop.f32.mrf.mxu2 }
 0x237   : > { %v775_v61 = vadd.f32 %v1558_v1, %v774_v60 }
 0x239   : > { %v799_v0 = vmax.f32 %v775_v61, 0.0 }
 0x23e   : > { %v776_v62 = vpop.f32.mrf.mxu2 }
 0x23f   : > { %v777_v63 = vadd.f32 %v1558_v1, %v776_v62 }
 0x241   : > { %v800_v2 = vmax.f32 %v777_v63, 0.0 }
 0x243   : > { %v810_v38 = vpack.c.bf16 %v800_v2, %v799_v0 }
 0x245   : > { %928 = vmatmul.bf16.gmra.mxu3 %v810_v38 }
 0x246   : > { %v779_v4 = vpop.f32.mrf.mxu2 }
 0x247   : > { %v780_v6 = vadd.f32 %v1558_v1, %v779_v4 }
 0x248   : > { %v889_v5 = vpop.f32.mrf.mxu3 }
 0x249   : > { %v890_v7 = vadd.f32 %v1584_v3, %v889_v5  ;;  %v801_v8 = vmax.f32 %v780_v6, 0.0 }
 0x24b   : > { %938 = vst [vmem:[%s1588_s28] sm:$0xff] %v890_v7  ;;  %v811_v11 = vpack.c.bf16 %v801_v8, %v801_v8 }
 0x24e   : > { %v781_v9 = vpop.f32.mrf.mxu2 }
 0x250   : > { %v891_v10 = vpop.f32.mrf.mxu3 }
 0x251   : > { %v892_v49 = vadd.f32 %v1584_v3, %v891_v10 }
 0x253   : > { %939 = vst [vmem:[%s1588_s28 + $0x8] sm:$0xff] %v892_v49 }
 0x255   : > { %933 = vmatmul.bf16.gmra.mxu3 %v811_v11 }
 0x258   : > { %v894_v1 = vpop.f32.mrf.mxu3 }
 0x259   : > { %v895_v12 = vadd.f32 %v1584_v3, %v894_v1 }
 0x25b   : > { %940 = vst [vmem:[%s1588_s28 + $0x10] sm:$0xff] %v895_v12 }
 0x260   : > { %v896_v13 = vpop.f32.mrf.mxu3 }
 0x261   : > { %v897_v14 = vadd.f32 %v1584_v3, %v896_v13 }
 0x263   : > { %941 = vst [vmem:[%s1588_s28 + $0x18] sm:$0xff] %v897_v14 }
 0x268   : > { %v899_v15 = vpop.f32.mrf.mxu3 }
 0x269   : > { %v900_v16 = vadd.f32 %v1584_v3, %v899_v15 }
 0x26b   : > { %942 = vst [vmem:[%s1588_s28 + $0x20] sm:$0xff] %v900_v16 }
 0x270   : > { %v901_v17 = vpop.f32.mrf.mxu3 }
 0x271   : > { %v902_v18 = vadd.f32 %v1584_v3, %v901_v17 }
 0x273   : > { %943 = vst [vmem:[%s1588_s28 + $0x28] sm:$0xff] %v902_v18 }
 0x278   : > { %v904_v19 = vpop.f32.mrf.mxu3 }
 0x279   : > { %v905_v20 = vadd.f32 %v1584_v3, %v904_v19 }
 0x27b   : > { %944 = vst [vmem:[%s1588_s28 + $0x30] sm:$0xff] %v905_v20 }
 0x280   : > { %v906_v21 = vpop.f32.mrf.mxu3 }
 0x281   : > { %v907_v22 = vadd.f32 %v1584_v3, %v906_v21 }
 0x283   : > { %945 = vst [vmem:[%s1588_s28 + $0x38] sm:$0xff] %v907_v22 }
 0x288   : > { %v909_v23 = vpop.f32.mrf.mxu3 }
 0x289   : > { %v910_v24 = vadd.f32 %v1584_v3, %v909_v23 }
 0x28b   : > { %946 = vst [vmem:[%s1588_s28 + $0x40] sm:$0xff] %v910_v24 }
 0x290   : > { %v911_v25 = vpop.f32.mrf.mxu3 }
 0x291   : > { %v912_v26 = vadd.f32 %v1584_v3, %v911_v25 }
 0x293   : > { %947 = vst [vmem:[%s1588_s28 + $0x48] sm:$0xff] %v912_v26 }
 0x298   : > { %v914_v27 = vpop.f32.mrf.mxu3 }
 0x299   : > { %v915_v28 = vadd.f32 %v1584_v3, %v914_v27 }
 0x29b   : > { %948 = vst [vmem:[%s1588_s28 + $0x50] sm:$0xff] %v915_v28 }
 0x2a0   : > { %v916_v29 = vpop.f32.mrf.mxu3 }
 0x2a1   : > { %v917_v30 = vadd.f32 %v1584_v3, %v916_v29 }
 0x2a3   : > { %949 = vst [vmem:[%s1588_s28 + $0x58] sm:$0xff] %v917_v30 }
 0x2a8   : > { %v919_v31 = vpop.f32.mrf.mxu3 }
 0x2a9   : > { %v920_v32 = vadd.f32 %v1584_v3, %v919_v31 }
 0x2ab   : > { %950 = vst [vmem:[%s1588_s28 + $0x60] sm:$0xff] %v920_v32 }
 0x2b0   : > { %v921_v33 = vpop.f32.mrf.mxu3 }
 0x2b1   : > { %v922_v34 = vadd.f32 %v1584_v3, %v921_v33 }
 0x2b3   : > { %951 = vst [vmem:[%s1588_s28 + $0x68] sm:$0xff] %v922_v34 }
 0x2b8   : > { %v924_v35 = vpop.f32.mrf.mxu3 }
 0x2b9   : > { %v925_v36 = vadd.f32 %v1584_v3, %v924_v35 }
 0x2bb   : > { %952 = vst [vmem:[%s1588_s28 + $0x70] sm:$0xff] %v925_v36 }
 0x2c0   : > { %v926_v37 = vpop.f32.mrf.mxu3 }
 0x2c1   : > { %v927_v39 = vadd.f32 %v1584_v3, %v926_v37 }
 0x2c3   : > { %953 = vst [vmem:[%s1588_s28 + $0x78] sm:$0xff] %v927_v39 }
 0x2c8   : > { %v929_v40 = vpop.f32.mrf.mxu3 }
 0x2c9   : > { %v930_v41 = vadd.f32 %v1584_v3, %v929_v40 }
 0x2cb   : > { %954 = vst [vmem:[%s1588_s28 + $0x80] sm:$0xff] %v930_v41 }
 0x2d0   : > { %v931_v42 = vpop.f32.mrf.mxu3 }
 0x2d1   : > { %v932_v43 = vadd.f32 %v1584_v3, %v931_v42 }
 0x2d3   : > { %955 = vst [vmem:[%s1588_s28 + $0x88] sm:$0xff] %v932_v43 }
 0x2d8   : > { %v934_v44 = vpop.f32.mrf.mxu3 }
 0x2d9   : > { %v935_v45 = vadd.f32 %v1584_v3, %v934_v44 }
 0x2db   : > { %956 = vst [vmem:[%s1588_s28 + $0x90] sm:$0xff] %v935_v45 }
 0x2dc   : > { %1257 = shalt.err (!%p1254_p3)
}
 0x2dd   : > { %s1294_s29 = smov 128   ;;  %s1295_s28 = smov 8  }
 0x2de   : > { %1185 = dma.vmem_to_hbm [thread:$0]  (%p1384_p5), %s971_s22, 2432, %s973_s23, %s958_s24, %s1294_s29, %s1294_s29, %s1295_s28  }
 0x2e0   : > { %v936_v46 = vpop.f32.mrf.mxu3 }
 0x2e1 PF: > { %p1191_p4 = scmp.ge.s32.totalorder %s1292_s12, 2  ;;  %s987_s21 = sand.u32 1, %s1280_s30  }
 0x2e2   : > { %s988_s13 = scalar_lea.sflag [#allocation3], %s987_s21 }
 0x2e3   : > { %p1188_p7 = pnand %p1191_p4, %p1388_p6 }
 0x2e5   : > { %p1189_p8 = pneg %p1188_p7 }
 0x2e7   : > { %1275 = dma.done.wait (%p1189_p8), %s988_s13, 2432  }
 0x2e8   : > { %1277 = vsyncadd (%p1189_p8), %s988_s13, 4294964864  ;;  %p19_p9 = scmp.ge.s32.totalorder %s1371_s15, 4   ;;  %s1673_s30 = smov %s1284_s10 }
 0x2e9   : > { %s1674_s10 = smov %s1288_s11  ;;  %s1675_s11 = smov %s1382_s18 }
 0x2ea   : > { %s1676_s12 = smov %s1371_s15  ;;  %21 = sbr.rel (!%p19_p9) target bundleno = 3 (0x3), region = 91 }
 0x2ef   :  { %994 = vsyncpa [#allocation3], 1 }
 0x2f0   :  { %996 = vsyncpa [#allocation3 + $0x1], 1 }

</bundles_post_ra>
